<compile_context>
chip_gen: v7x
topology: tpu7x:2x2x1
jax: 0.10.0
libtpu: 0.0.40
codegen_flags: <defaults>
</compile_context>

<pallas_src>
import jax
import jax.numpy as jnp
from jax import lax
from jax.experimental import pallas as pl
from jax.experimental.pallas import tpu as pltpu

BN_EPS = 1e-5
CT = 128                       # channel (lane) tile
VMEM_LIMIT = 32 * 1024 * 1024  # explicit scoped-VMEM budget (safe on v5e/v6e/v7x)


def _pick_row_tile(h, w, target_rows=256):
    """Largest divisor of h giving <= target_rows spatial positions per matmul tile."""
    target = max(1, target_rows // max(w, 1))
    best = 1
    for cand in range(1, h + 1):
        if h % cand == 0 and cand <= target:
            best = cand
    return best


def _conv_stats_kernel(p_ref, w_ref, b_ref, yconv_ref, stats_ref):
    # p_ref     : (TH, W, 9*Cin)  im2col patches (halo already folded in)
    # w_ref     : (9*Cin, CT)     flattened HWIO weight slab (Cout padded to lanes)
    # b_ref     : (1, CT)         conv bias slab
    # yconv_ref : (TH, W, CT)     conv(+bias) activations (lane-dense)
    # stats_ref : (2, CT)         row 0 = sum, row 1 = sum of squares
    th, w_sp, ct = yconv_ref.shape
    kdim = p_ref.shape[-1]

    patches = p_ref[...].reshape(th * w_sp, kdim)   # native dtype -> MXU
    acc = jnp.dot(patches, w_ref[...], preferred_element_type=jnp.float32)
    acc = acc + b_ref[...].astype(jnp.float32)

    yconv_ref[...] = acc.reshape(th, w_sp, ct).astype(yconv_ref.dtype)
    # Per-tile partial BN statistics (reduced globally outside the kernel).
    stats_ref[0:1, :] = jnp.sum(acc, axis=0, keepdims=True)
    stats_ref[1:2, :] = jnp.sum(acc * acc, axis=0, keepdims=True)


def _bn_relu_kernel(y_ref, scale_ref, shift_ref, o_ref):
    # y_ref     : (TH, W, CT)  conv activations
    # scale_ref : (1, CT)      gamma * rsqrt(var + eps)
    # shift_ref : (1, CT)      beta - mean * scale
    y = y_ref[...]
    s = scale_ref[...].reshape(1, 1, -1)
    t = shift_ref[...].reshape(1, 1, -1)
    o_ref[...] = jnp.maximum(y * s + t, 0.0).astype(o_ref.dtype)


@jax.jit
def conv_batch_norm(x_nchw, w_oihw, bias, gamma, beta):
    """Forward of ConvBatchNorm. x_nchw: (N, Cin, H, W) -> (N, Cout, H, W)."""
    # --- layout glue (outside the kernels): NCHW -> NHWC, im2col, OIHW -> flat ---
    x = jnp.transpose(x_nchw, (0, 2, 3, 1))
    n, h, w, cin = x.shape
    cout = w_oihw.shape[0]
    kdim = 9 * cin

    cp = ((cout + CT - 1) // CT) * CT         # Cout padded to lane multiple
    n_ct = cp // CT
    th = _pick_row_tile(h, w)
    num_th = h // th
    nt = n * num_th

    # im2col: channel order (dy, dx, cin) — matches row-major flatten of HWIO weight.
    x_pad = jnp.pad(x, ((0, 0), (1, 1), (1, 1), (0, 0)))
    patches = jnp.concatenate(
        [x_pad[:, dy:dy + h, dx:dx + w, :] for dy in range(3) for dx in range(3)],
        axis=-1,
    ).reshape(nt, th, w, kdim)                # non-overlapping row tiles

    w_hwio = jnp.transpose(w_oihw, (2, 3, 1, 0))                    # (3,3,Cin,Cout)
    w_flat = jnp.pad(w_hwio, ((0, 0), (0, 0), (0, 0), (0, cp - cout))
                     ).reshape(kdim, cp)                            # (9*Cin, Cp)
    b_p = jnp.pad(bias, (0, cp - cout)).reshape(n_ct, 1, CT)
    gamma_p = jnp.pad(gamma, (0, cp - cout), constant_values=1.0)
    beta_p = jnp.pad(beta, (0, cp - cout))

    # ---------------- pass 1: conv + bias + partial BN stats ----------------
    yconv, stats = pl.pallas_call(
        _conv_stats_kernel,
        out_shape=(
            jax.ShapeDtypeStruct((nt, th, w, cp), jnp.float32),
            jax.ShapeDtypeStruct((nt, n_ct, 2, CT), jnp.float32),
        ),
        grid=(nt, n_ct),
        in_specs=[
            pl.BlockSpec((None, th, w, kdim), lambda i, c: (i, 0, 0, 0)),
            pl.BlockSpec((kdim, CT), lambda i, c: (0, c)),
            pl.BlockSpec((None, 1, CT), lambda i, c: (c, 0, 0)),
        ],
        out_specs=(
            pl.BlockSpec((None, th, w, CT), lambda i, c: (i, 0, 0, c)),
            pl.BlockSpec((None, None, 2, CT), lambda i, c: (i, c, 0, 0)),
        ),
        compiler_params=pltpu.CompilerParams(
            dimension_semantics=("parallel", "parallel"),
            vmem_limit_bytes=VMEM_LIMIT),
    )(patches, w_flat, b_p)

    # --------- tiny global reduction + per-channel scale/shift (XLA) --------
    count = jnp.float32(n * h * w)
    sums = stats[:, :, 0, :].sum(axis=0).reshape(cp)
    sumsq = stats[:, :, 1, :].sum(axis=0).reshape(cp)
    mean = sums / count
    var = jnp.maximum(sumsq / count - mean * mean, 0.0)   # single-pass var, f32
    scale = gamma_p * lax.rsqrt(var + BN_EPS)
    shift = beta_p - mean * scale
    scale3 = scale.reshape(n_ct, 1, CT)
    shift3 = shift.reshape(n_ct, 1, CT)

    # ---------------- pass 2: fused normalize + affine + ReLU ---------------
    out_p = pl.pallas_call(
        _bn_relu_kernel,
        out_shape=jax.ShapeDtypeStruct((nt, th, w, cp), jnp.float32),
        grid=(nt, n_ct),
        in_specs=[
            pl.BlockSpec((None, th, w, CT), lambda i, c: (i, 0, 0, c)),
            pl.BlockSpec((None, 1, CT), lambda i, c: (c, 0, 0)),
            pl.BlockSpec((None, 1, CT), lambda i, c: (c, 0, 0)),
        ],
        out_specs=pl.BlockSpec((None, th, w, CT), lambda i, c: (i, 0, 0, c)),
        compiler_params=pltpu.CompilerParams(
            dimension_semantics=("parallel", "parallel"),
            vmem_limit_bytes=VMEM_LIMIT),
    )(yconv, scale3, shift3)

    # --- layout glue: un-tile rows, drop channel padding, NHWC -> NCHW ------
    out = out_p.reshape(n, num_th, th, w, cp)[..., :cout].reshape(n, h, w, cout)
    return jnp.transpose(out, (0, 3, 1, 2))


def _reference(x_nchw, w_oihw, bias, gamma, beta):
    """Pure-JAX reference (conv + training-mode BN + ReLU), NCHW in/out."""
    x = jnp.transpose(x_nchw, (0, 2, 3, 1)).astype(jnp.float32)
    w = jnp.transpose(w_oihw, (2, 3, 1, 0)).astype(jnp.float32)
    y = lax.conv_general_dilated(
        x, w, window_strides=(1, 1), padding=((1, 1), (1, 1)),
        dimension_numbers=("NHWC", "HWIO", "NHWC"))
    y = y + bias.reshape(1, 1, 1, -1)
    mean = jnp.mean(y, axis=(0, 1, 2), keepdims=True)
    var = jnp.mean((y - mean) ** 2, axis=(0, 1, 2), keepdims=True)
    y = (y - mean) * lax.rsqrt(var + BN_EPS)
    y = y * gamma.reshape(1, 1, 1, -1) + beta.reshape(1, 1, 1, -1)
    y = jnp.maximum(y, 0.0)
    return jnp.transpose(y, (0, 3, 1, 2))


if __name__ == "__main__":
    # Small shapes consistent with ConvBatchNorm(in_channels=4, out_channels=8)
    N, Cin, Cout, H, W = 2, 4, 8, 16, 16

    key = jax.random.PRNGKey(0)
    kx, kw, kb, kg, kbe = jax.random.split(key, 5)

    x = jax.random.normal(kx, (N, Cin, H, W), dtype=jnp.float32)
    w = jax.random.normal(kw, (Cout, Cin, 3, 3), dtype=jnp.float32) * 0.1
    b = jax.random.normal(kb, (Cout,), dtype=jnp.float32) * 0.1
    gamma = 1.0 + 0.1 * jax.random.normal(kg, (Cout,), dtype=jnp.float32)
    beta = 0.1 * jax.random.normal(kbe, (Cout,), dtype=jnp.float32)

    out = conv_batch_norm(x, w, b, gamma, beta)
    out = jax.block_until_ready(out)

    ref = _reference(x, w, b, gamma, beta)
    assert out.shape == (N, Cout, H, W)
    assert jnp.allclose(out, ref, atol=1e-4, rtol=1e-4), (
        float(jnp.max(jnp.abs(out - ref))))

    print("KERNEL_OK")
</pallas_src>

<mosaic_0001>
module attributes {stable_mosaic.version = 11 : i64} {
  func.func @_conv_stats_kernel(%arg0: i32, %arg1: i32, %arg2: memref<1x16x16x36xf32, #tpu.memory_space<vmem>>, %arg3: memref<36x128xf32, #tpu.memory_space<vmem>>, %arg4: memref<1x1x128xf32, #tpu.memory_space<vmem>>, %arg5: memref<1x16x16x128xf32, #tpu.memory_space<vmem>>, %arg6: memref<1x1x2x128xf32, #tpu.memory_space<vmem>>) attributes {dimension_semantics = [#tpu.dimension_semantics<parallel>, #tpu.dimension_semantics<parallel>], iteration_bounds = array<i64: 2, 1>, scalar_prefetch = 0 : i64, scratch_operands = 0 : i64, tpu.core_type = #tpu.core_type<tc>, window_params = [{transform_indices = @transform_0, window_bounds = array<i64: 1, 16, 16, 36>}, {transform_indices = @transform_1, window_bounds = array<i64: 36, 128>}, {transform_indices = @transform_2, window_bounds = array<i64: 1, 1, 128>}, {transform_indices = @transform_3, window_bounds = array<i64: 1, 16, 16, 128>}, {transform_indices = @transform_4, window_bounds = array<i64: 1, 1, 2, 128>}]} {
    %c0 = arith.constant 0 : index
    %c0_0 = arith.constant 0 : index
    %c0_1 = arith.constant 0 : index
    %c0_2 = arith.constant 0 : index
    %0 = vector.load %arg2[%c0, %c0_0, %c0_1, %c0_2] : memref<1x16x16x36xf32, #tpu.memory_space<vmem>>, vector<1x16x16x36xf32>
    %1 = vector.shape_cast %0 : vector<1x16x16x36xf32> to vector<16x16x36xf32>
    %2 = vector.shape_cast %1 : vector<16x16x36xf32> to vector<256x36xf32>
    %c0_3 = arith.constant 0 : index
    %c0_4 = arith.constant 0 : index
    %3 = vector.load %arg3[%c0_3, %c0_4] : memref<36x128xf32, #tpu.memory_space<vmem>>, vector<36x128xf32>
    %cst = arith.constant dense<0.000000e+00> : vector<256x128xf32>
    %4 = tpu.matmul %2, %3, %cst {dimension_numbers = #tpu.dot_dimension_numbers<[1], [0], [0], [1], [0, 0, 1, 1], [], []>} : vector<256x36xf32>, vector<36x128xf32>, vector<256x128xf32> -> vector<256x128xf32>
    %c0_5 = arith.constant 0 : index
    %c0_6 = arith.constant 0 : index
    %c0_7 = arith.constant 0 : index
    %5 = vector.load %arg4[%c0_5, %c0_6, %c0_7] : memref<1x1x128xf32, #tpu.memory_space<vmem>>, vector<1x1x128xf32>
    %6 = vector.shape_cast %5 : vector<1x1x128xf32> to vector<1x128xf32>
    %7 = vector.broadcast %6 : vector<1x128xf32> to vector<256x128xf32>
    %8 = arith.addf %4, %7 : vector<256x128xf32>
    %9 = vector.shape_cast %8 : vector<256x128xf32> to vector<16x16x128xf32>
    %c0_8 = arith.constant 0 : index
    %c0_9 = arith.constant 0 : index
    %c0_10 = arith.constant 0 : index
    %c0_11 = arith.constant 0 : index
    %10 = vector.load %arg5[%c0_8, %c0_9, %c0_10, %c0_11] : memref<1x16x16x128xf32, #tpu.memory_space<vmem>>, vector<1x16x16x128xf32>
    %11 = vector.shape_cast %10 : vector<1x16x16x128xf32> to vector<16x16x128xf32>
    %12 = vector.shape_cast %9 : vector<16x16x128xf32> to vector<1x16x16x128xf32>
    tpu.vector_store %arg5[%c0_8, %c0_9, %c0_10, %c0_11], %12 {strides = array<i32>} : memref<1x16x16x128xf32, #tpu.memory_space<vmem>>, vector<1x16x16x128xf32>,
    %cst_12 = arith.constant dense<0.000000e+00> : vector<128xf32>
    %13 = vector.multi_reduction <add>, %8, %cst_12 [0] : vector<256x128xf32> to vector<128xf32>
    %14 = vector.shape_cast %13 : vector<128xf32> to vector<1x128xf32>
    %c0_13 = arith.constant 0 : index
    %c0_14 = arith.constant 0 : index
    %c0_15 = arith.constant 0 : index
    %c0_16 = arith.constant 0 : index
    %15 = vector.load %arg6[%c0_13, %c0_14, %c0_15, %c0_16] : memref<1x1x2x128xf32, #tpu.memory_space<vmem>>, vector<1x1x1x128xf32>
    %16 = vector.shape_cast %15 : vector<1x1x1x128xf32> to vector<1x128xf32>
    %17 = vector.shape_cast %14 : vector<1x128xf32> to vector<1x1x1x128xf32>
    tpu.vector_store %arg6[%c0_13, %c0_14, %c0_15, %c0_16], %17 {strides = array<i32>} : memref<1x1x2x128xf32, #tpu.memory_space<vmem>>, vector<1x1x1x128xf32>,
    %18 = arith.mulf %8, %8 : vector<256x128xf32>
    %cst_17 = arith.constant dense<0.000000e+00> : vector<128xf32>
    %19 = vector.multi_reduction <add>, %18, %cst_17 [0] : vector<256x128xf32> to vector<128xf32>
    %20 = vector.shape_cast %19 : vector<128xf32> to vector<1x128xf32>
    %c0_18 = arith.constant 0 : index
    %c0_19 = arith.constant 0 : index
    %c1 = arith.constant 1 : index
    %c0_20 = arith.constant 0 : index
    %21 = vector.load %arg6[%c0_18, %c0_19, %c1, %c0_20] : memref<1x1x2x128xf32, #tpu.memory_space<vmem>>, vector<1x1x1x128xf32>
    %22 = vector.shape_cast %21 : vector<1x1x1x128xf32> to vector<1x128xf32>
    %23 = vector.shape_cast %20 : vector<1x128xf32> to vector<1x1x1x128xf32>
    tpu.vector_store %arg6[%c0_18, %c0_19, %c1, %c0_20], %23 {strides = array<i32>} : memref<1x1x2x128xf32, #tpu.memory_space<vmem>>, vector<1x1x1x128xf32>,
    return
  }
  func.func @transform_0(%arg0: i32, %arg1: i32) -> (i32, i32, i32, i32) {
    %c0_i32 = arith.constant 0 : i32
    %c0_i32_0 = arith.constant 0 : i32
    %c0_i32_1 = arith.constant 0 : i32
    %c0_i32_2 = arith.constant 0 : i32
    return %arg0, %c0_i32, %c0_i32_0, %c0_i32_1 : i32, i32, i32, i32
  }
  func.func @transform_1(%arg0: i32, %arg1: i32) -> (i32, i32) {
    %c0_i32 = arith.constant 0 : i32
    %c0_i32_0 = arith.constant 0 : i32
    return %c0_i32, %arg1 : i32, i32
  }
  func.func @transform_2(%arg0: i32, %arg1: i32) -> (i32, i32, i32) {
    %c0_i32 = arith.constant 0 : i32
    %c0_i32_0 = arith.constant 0 : i32
    %c0_i32_1 = arith.constant 0 : i32
    return %arg1, %c0_i32, %c0_i32_0 : i32, i32, i32
  }
  func.func @transform_3(%arg0: i32, %arg1: i32) -> (i32, i32, i32, i32) {
    %c0_i32 = arith.constant 0 : i32
    %c0_i32_0 = arith.constant 0 : i32
    %c0_i32_1 = arith.constant 0 : i32
    return %arg0, %c0_i32, %c0_i32_0, %arg1 : i32, i32, i32, i32
  }
  func.func @transform_4(%arg0: i32, %arg1: i32) -> (i32, i32, i32, i32) {
    %c0_i32 = arith.constant 0 : i32
    %c0_i32_0 = arith.constant 0 : i32
    %c0_i32_1 = arith.constant 0 : i32
    return %arg0, %arg1, %c0_i32, %c0_i32_0 : i32, i32, i32, i32
  }
}

module attributes {stable_mosaic.version = 11 : i64} {
  func.func @_bn_relu_kernel(%arg0: i32, %arg1: i32, %arg2: memref<1x16x16x128xf32, #tpu.memory_space<vmem>>, %arg3: memref<1x1x128xf32, #tpu.memory_space<vmem>>, %arg4: memref<1x1x128xf32, #tpu.memory_space<vmem>>, %arg5: memref<1x16x16x128xf32, #tpu.memory_space<vmem>>) attributes {dimension_semantics = [#tpu.dimension_semantics<parallel>, #tpu.dimension_semantics<parallel>], iteration_bounds = array<i64: 2, 1>, scalar_prefetch = 0 : i64, scratch_operands = 0 : i64, tpu.core_type = #tpu.core_type<tc>, window_params = [{transform_indices = @transform_0, window_bounds = array<i64: 1, 16, 16, 128>}, {transform_indices = @transform_1, window_bounds = array<i64: 1, 1, 128>}, {transform_indices = @transform_2, window_bounds = array<i64: 1, 1, 128>}, {transform_indices = @transform_3, window_bounds = array<i64: 1, 16, 16, 128>}]} {
    %c0 = arith.constant 0 : index
    %c0_0 = arith.constant 0 : index
    %c0_1 = arith.constant 0 : index
    %c0_2 = arith.constant 0 : index
    %0 = vector.load %arg2[%c0, %c0_0, %c0_1, %c0_2] : memref<1x16x16x128xf32, #tpu.memory_space<vmem>>, vector<1x16x16x128xf32>
    %1 = vector.shape_cast %0 : vector<1x16x16x128xf32> to vector<16x16x128xf32>
    %c0_3 = arith.constant 0 : index
    %c0_4 = arith.constant 0 : index
    %c0_5 = arith.constant 0 : index
    %2 = vector.load %arg3[%c0_3, %c0_4, %c0_5] : memref<1x1x128xf32, #tpu.memory_space<vmem>>, vector<1x1x128xf32>
    %3 = vector.shape_cast %2 : vector<1x1x128xf32> to vector<1x128xf32>
    %4 = vector.shape_cast %3 : vector<1x128xf32> to vector<1x1x128xf32>
    %c0_6 = arith.constant 0 : index
    %c0_7 = arith.constant 0 : index
    %c0_8 = arith.constant 0 : index
    %5 = vector.load %arg4[%c0_6, %c0_7, %c0_8] : memref<1x1x128xf32, #tpu.memory_space<vmem>>, vector<1x1x128xf32>
    %6 = vector.shape_cast %5 : vector<1x1x128xf32> to vector<1x128xf32>
    %7 = vector.shape_cast %6 : vector<1x128xf32> to vector<1x1x128xf32>
    %8 = vector.broadcast %4 : vector<1x1x128xf32> to vector<16x16x128xf32>
    %9 = arith.mulf %1, %8 : vector<16x16x128xf32>
    %10 = vector.broadcast %7 : vector<1x1x128xf32> to vector<16x16x128xf32>
    %11 = arith.addf %9, %10 : vector<16x16x128xf32>
    %cst = arith.constant 0.000000e+00 : f32
    %12 = vector.broadcast %cst : f32 to vector<16x16x128xf32>
    %13 = arith.maximumf %11, %12 : vector<16x16x128xf32>
    %c0_9 = arith.constant 0 : index
    %c0_10 = arith.constant 0 : index
    %c0_11 = arith.constant 0 : index
    %c0_12 = arith.constant 0 : index
    %14 = vector.load %arg5[%c0_9, %c0_10, %c0_11, %c0_12] : memref<1x16x16x128xf32, #tpu.memory_space<vmem>>, vector<1x16x16x128xf32>
    %15 = vector.shape_cast %14 : vector<1x16x16x128xf32> to vector<16x16x128xf32>
    %16 = vector.shape_cast %13 : vector<16x16x128xf32> to vector<1x16x16x128xf32>
    tpu.vector_store %arg5[%c0_9, %c0_10, %c0_11, %c0_12], %16 {strides = array<i32>} : memref<1x16x16x128xf32, #tpu.memory_space<vmem>>, vector<1x16x16x128xf32>,
    return
  }
  func.func @transform_0(%arg0: i32, %arg1: i32) -> (i32, i32, i32, i32) {
    %c0_i32 = arith.constant 0 : i32
    %c0_i32_0 = arith.constant 0 : i32
    %c0_i32_1 = arith.constant 0 : i32
    return %arg0, %c0_i32, %c0_i32_0, %arg1 : i32, i32, i32, i32
  }
  func.func @transform_1(%arg0: i32, %arg1: i32) -> (i32, i32, i32) {
    %c0_i32 = arith.constant 0 : i32
    %c0_i32_0 = arith.constant 0 : i32
    %c0_i32_1 = arith.constant 0 : i32
    return %arg1, %c0_i32, %c0_i32_0 : i32, i32, i32
  }
  func.func @transform_2(%arg0: i32, %arg1: i32) -> (i32, i32, i32) {
    %c0_i32 = arith.constant 0 : i32
    %c0_i32_0 = arith.constant 0 : i32
    %c0_i32_1 = arith.constant 0 : i32
    return %arg1, %c0_i32, %c0_i32_0 : i32, i32, i32
  }
  func.func @transform_3(%arg0: i32, %arg1: i32) -> (i32, i32, i32, i32) {
    %c0_i32 = arith.constant 0 : i32
    %c0_i32_0 = arith.constant 0 : i32
    %c0_i32_1 = arith.constant 0 : i32
    return %arg0, %c0_i32, %c0_i32_0, %arg1 : i32, i32, i32, i32
  }
}

</mosaic_0001>

<bundles_post_ra>
// kernel: conv_batch_norm.3
= control target key start
LH: loop header
LB: loop body
LE: loop exit
PB: predicated region body
PF: predicated region fallthrough
CT: control target
= control target key end

     0   :  { %s597_s12 = smov 0   ;;  %s599_s13 = smov 0   ;;  %s772_s0 = inlined_call_operand.vmem [shape: f32[2,16,16,128], index: 0, kind: input, shape index: {}]   ;;  %s773_s1 = inlined_call_operand.vmem [shape: f32[1,1,128], index: 1, kind: input, shape index: {}]   ;;  %s774_s2 = inlined_call_operand.vmem [shape: f32[1,1,128], index: 2, kind: input, shape index: {}]   ;;  %s775_s3 = inlined_call_operand.vmem [shape: f32[2,16,16,128], index: 3, kind: output, shape index: {}]  }
   0x1   :  { %s601_s14 = smov 0  }
   0x2 LB: > { %s25_s15 = sadd.s32 1, %s571_s13  ;;  %p518_p0 = scmp.ge.s32.totalorder %s575_s14, 1  ;;  %s575_s14 = sphi %s601_s14, %s13_s14   ;;  %s571_s13 = sphi %s599_s13, %s777_s13   ;;  %s567_s12 = sphi %s597_s12, %s776_s12  }
   0x3   : > { %p27_p1 = scmp.ge.s32.totalorder %s25_s15, 2  ;;  %p172_p2 = scmp.lt.s32.totalorder %s575_s14, 3 }
   0x5   : > { %s779_s15 = smov (%p27_p1, %s25_s15), 0  ;;  %p173_p3 = pnand %p518_p0, %p172_p2 }
   0x6   : > { %p208_p4 = scmp.lt.s32.totalorder (!%p173_p3), %s567_s12, 1  ;;  %v618_v0 = vld [vmem:[%s773_s1] ss:$0 sm:$0xff] (!%p173_p3) }
   0x7   : > { %176 = sbr.rel (%p173_p3) target bundleno = 47 (0x2f), region = 32  ;;  %v628_v1 = vld [vmem:[%s774_s2] ss:$0 sm:$0xff] (!%p173_p3) }
   0xe   : > { %s781_s12 = smov (!%p208_p4, %s567_s12), 1 }
   0xf   : > { %s527_s16 = sshll.u32 %s781_s12, 8 }
  0x10   : > { %s623_s21 = scalar_lea.vmem %s772_s0, %s527_s16  ;;  %s651_s26 = scalar_lea.vmem %s775_s3, %s527_s16 }
  0x11   : > { %v230_v2 = vld [vmem:[%s623_s21] sm:$0xff]  ;;  %v231_v3 = vld [vmem:[%s623_s21 + $0x8] sm:$0xff]  ;;  %v232_v4 = vld [vmem:[%s623_s21 + $0x10] sm:$0xff] }
  0x12   : > { %v270_v5 = vmul.f32 %v618_v0, %v230_v2  ;;  %v271_v6 = vmul.f32 %v618_v0, %v231_v3  ;;  %v272_v7 = vmul.f32 %v618_v0, %v232_v4  ;;  %v233_v8 = vld [vmem:[%s623_s21 + $0x18] sm:$0xff]  ;;  %v234_v9 = vld [vmem:[%s623_s21 + $0x20] sm:$0xff]  ;;  %v235_v10 = vld [vmem:[%s623_s21 + $0x28] sm:$0xff] }
  0x13   : > { %v273_v11 = vmul.f32 %v618_v0, %v233_v8  ;;  %v274_v12 = vmul.f32 %v618_v0, %v234_v9  ;;  %v275_v13 = vmul.f32 %v618_v0, %v235_v10  ;;  %v236_v14 = vld [vmem:[%s623_s21 + $0x30] sm:$0xff]  ;;  %v237_v15 = vld [vmem:[%s623_s21 + $0x38] sm:$0xff]  ;;  %v238_v24 = vld [vmem:[%s623_s21 + $0x40] sm:$0xff] }
  0x14   : > { %v308_v16 = vadd.f32 %v628_v1, %v270_v5  ;;  %v309_v17 = vadd.f32 %v628_v1, %v271_v6  ;;  %v310_v18 = vadd.f32 %v628_v1, %v272_v7  ;;  %v276_v19 = vmul.f32 %v618_v0, %v236_v14  ;;  %v239_v25 = vld [vmem:[%s623_s21 + $0x48] sm:$0xff]  ;;  %v240_v26 = vld [vmem:[%s623_s21 + $0x50] sm:$0xff]  ;;  %v241_v31 = vld [vmem:[%s623_s21 + $0x58] sm:$0xff] }
  0x15   : > { %v311_v20 = vadd.f32 %v628_v1, %v273_v11  ;;  %v312_v21 = vadd.f32 %v628_v1, %v274_v12  ;;  %v313_v22 = vadd.f32 %v628_v1, %v275_v13  ;;  %v277_v23 = vmul.f32 %v618_v0, %v237_v15  ;;  %v242_v32 = vld [vmem:[%s623_s21 + $0x60] sm:$0xff]  ;;  %v243_v33 = vld [vmem:[%s623_s21 + $0x68] sm:$0xff]  ;;  %v244_v38 = vld [vmem:[%s623_s21 + $0x70] sm:$0xff] }
  0x16   : > { %v340_v27 = vmax.f32 %v308_v16, 0.0  ;;  %v341_v28 = vmax.f32 %v309_v17, 0.0  ;;  %v342_v29 = vmax.f32 %v310_v18, 0.0  ;;  %v314_v30 = vadd.f32 %v628_v1, %v276_v19  ;;  %v245_v43 = vld [vmem:[%s623_s21 + $0x78] sm:$0xff]  ;;  %v246_v56 = vld [vmem:[%s623_s21 + $0x80] sm:$0xff]  ;;  %v247_v57 = vld [vmem:[%s623_s21 + $0x88] sm:$0xff] }
  0x17   : > { %v343_v34 = vmax.f32 %v311_v20, 0.0  ;;  %v344_v35 = vmax.f32 %v312_v21, 0.0  ;;  %v345_v36 = vmax.f32 %v313_v22, 0.0  ;;  %v315_v37 = vadd.f32 %v628_v1, %v277_v23  ;;  %v248_v58 = vld [vmem:[%s623_s21 + $0x90] sm:$0xff]  ;;  %v249_v63 = vld [vmem:[%s623_s21 + $0x98] sm:$0xff]  ;;  %v250_v2 = vld [vmem:[%s623_s21 + $0xa0] sm:$0xff] }
  0x18   : > { %372 = vst [vmem:[%s651_s26] sm:$0xff] %v340_v27  ;;  %373 = vst [vmem:[%s651_s26 + $0x8] sm:$0xff] %v341_v28  ;;  %v346_v39 = vmax.f32 %v314_v30, 0.0  ;;  %v278_v40 = vmul.f32 %v618_v0, %v238_v24  ;;  %v279_v41 = vmul.f32 %v618_v0, %v239_v25  ;;  %v280_v42 = vmul.f32 %v618_v0, %v240_v26  ;;  %v251_v3 = vld [vmem:[%s623_s21 + $0xa8] sm:$0xff]  ;;  %v252_v8 = vld [vmem:[%s623_s21 + $0xb0] sm:$0xff] }
  0x19   : > { %374 = vst [vmem:[%s651_s26 + $0x10] sm:$0xff] %v342_v29  ;;  %375 = vst [vmem:[%s651_s26 + $0x18] sm:$0xff] %v343_v34  ;;  %v347_v44 = vmax.f32 %v315_v37, 0.0  ;;  %v281_v45 = vmul.f32 %v618_v0, %v241_v31  ;;  %v282_v46 = vmul.f32 %v618_v0, %v242_v32  ;;  %v283_v47 = vmul.f32 %v618_v0, %v243_v33  ;;  %v253_v13 = vld [vmem:[%s623_s21 + $0xb8] sm:$0xff]  ;;  %v254_v26 = vld [vmem:[%s623_s21 + $0xc0] sm:$0xff] }
  0x1a   : > { %376 = vst [vmem:[%s651_s26 + $0x20] sm:$0xff] %v344_v35  ;;  %377 = vst [vmem:[%s651_s26 + $0x28] sm:$0xff] %v345_v36  ;;  %v316_v48 = vadd.f32 %v628_v1, %v278_v40  ;;  %v317_v49 = vadd.f32 %v628_v1, %v279_v41  ;;  %v318_v50 = vadd.f32 %v628_v1, %v280_v42  ;;  %v255_v27 = vld [vmem:[%s623_s21 + $0xc8] sm:$0xff]  ;;  %v256_v28 = vld [vmem:[%s623_s21 + $0xd0] sm:$0xff] }
  0x1b   : > { %378 = vst [vmem:[%s651_s26 + $0x30] sm:$0xff] %v346_v39  ;;  %v284_v51 = vmul.f32 %v618_v0, %v244_v38  ;;  %379 = vst [vmem:[%s651_s26 + $0x38] sm:$0xff] %v347_v44  ;;  %v319_v52 = vadd.f32 %v628_v1, %v281_v45  ;;  %v320_v53 = vadd.f32 %v628_v1, %v282_v46  ;;  %v257_v33 = vld [vmem:[%s623_s21 + $0xd8] sm:$0xff]  ;;  %v258_v34 = vld [vmem:[%s623_s21 + $0xe0] sm:$0xff] }
  0x1c   : > { %v321_v54 = vadd.f32 %v628_v1, %v283_v47  ;;  %v285_v55 = vmul.f32 %v618_v0, %v245_v43  ;;  %v348_v59 = vmax.f32 %v316_v48, 0.0  ;;  %v349_v60 = vmax.f32 %v317_v49, 0.0  ;;  %v259_v35 = vld [vmem:[%s623_s21 + $0xe8] sm:$0xff]  ;;  %v260_v40 = vld [vmem:[%s623_s21 + $0xf0] sm:$0xff]  ;;  %v261_v45 = vld [vmem:[%s623_s21 + $0xf8] sm:$0xff] }
  0x1d   : > { %v350_v61 = vmax.f32 %v318_v50, 0.0  ;;  %v322_v62 = vadd.f32 %v628_v1, %v284_v51  ;;  %v351_v4 = vmax.f32 %v319_v52, 0.0  ;;  %v352_v5 = vmax.f32 %v320_v53, 0.0 }
  0x1e   : > { %v353_v6 = vmax.f32 %v321_v54, 0.0  ;;  %v323_v7 = vadd.f32 %v628_v1, %v285_v55  ;;  %380 = vst [vmem:[%s651_s26 + $0x40] sm:$0xff] %v348_v59  ;;  %381 = vst [vmem:[%s651_s26 + $0x48] sm:$0xff] %v349_v60  ;;  %v286_v10 = vmul.f32 %v618_v0, %v246_v56  ;;  %v287_v11 = vmul.f32 %v618_v0, %v247_v57 }
  0x1f   : > { %382 = vst [vmem:[%s651_s26 + $0x50] sm:$0xff] %v350_v61  ;;  %v354_v9 = vmax.f32 %v322_v62, 0.0  ;;  %v288_v12 = vmul.f32 %v618_v0, %v248_v58  ;;  %383 = vst [vmem:[%s651_s26 + $0x58] sm:$0xff] %v351_v4  ;;  %v289_v15 = vmul.f32 %v618_v0, %v249_v63  ;;  %v290_v16 = vmul.f32 %v618_v0, %v250_v2 }
  0x20   : > { %384 = vst [vmem:[%s651_s26 + $0x60] sm:$0xff] %v352_v5  ;;  %385 = vst [vmem:[%s651_s26 + $0x68] sm:$0xff] %v353_v6  ;;  %v355_v14 = vmax.f32 %v323_v7, 0.0  ;;  %v291_v17 = vmul.f32 %v618_v0, %v251_v3  ;;  %v324_v18 = vadd.f32 %v628_v1, %v286_v10  ;;  %v325_v19 = vadd.f32 %v628_v1, %v287_v11 }
  0x21   : > { %386 = vst [vmem:[%s651_s26 + $0x70] sm:$0xff] %v354_v9  ;;  %v326_v20 = vadd.f32 %v628_v1, %v288_v12  ;;  %v292_v21 = vmul.f32 %v618_v0, %v252_v8  ;;  %v327_v22 = vadd.f32 %v628_v1, %v289_v15  ;;  %v328_v23 = vadd.f32 %v628_v1, %v290_v16 }
  0x22   : > { %387 = vst [vmem:[%s651_s26 + $0x78] sm:$0xff] %v355_v14  ;;  %v329_v24 = vadd.f32 %v628_v1, %v291_v17  ;;  %v293_v25 = vmul.f32 %v618_v0, %v253_v13  ;;  %v356_v29 = vmax.f32 %v324_v18, 0.0  ;;  %v357_v30 = vmax.f32 %v325_v19, 0.0 }
  0x23   : > { %v358_v31 = vmax.f32 %v326_v20, 0.0  ;;  %v330_v32 = vadd.f32 %v628_v1, %v292_v21  ;;  %v359_v36 = vmax.f32 %v327_v22, 0.0  ;;  %v360_v37 = vmax.f32 %v328_v23, 0.0 }
  0x24   : > { %v361_v38 = vmax.f32 %v329_v24, 0.0  ;;  %v331_v39 = vadd.f32 %v628_v1, %v293_v25  ;;  %388 = vst [vmem:[%s651_s26 + $0x80] sm:$0xff] %v356_v29  ;;  %389 = vst [vmem:[%s651_s26 + $0x88] sm:$0xff] %v357_v30  ;;  %v294_v42 = vmul.f32 %v618_v0, %v254_v26  ;;  %v295_v43 = vmul.f32 %v618_v0, %v255_v27 }
  0x25   : > { %390 = vst [vmem:[%s651_s26 + $0x90] sm:$0xff] %v358_v31  ;;  %v362_v41 = vmax.f32 %v330_v32, 0.0  ;;  %v296_v44 = vmul.f32 %v618_v0, %v256_v28  ;;  %391 = vst [vmem:[%s651_s26 + $0x98] sm:$0xff] %v359_v36  ;;  %v297_v47 = vmul.f32 %v618_v0, %v257_v33  ;;  %v298_v48 = vmul.f32 %v618_v0, %v258_v34 }
  0x26   : > { %392 = vst [vmem:[%s651_s26 + $0xa0] sm:$0xff] %v360_v37  ;;  %393 = vst [vmem:[%s651_s26 + $0xa8] sm:$0xff] %v361_v38  ;;  %v363_v46 = vmax.f32 %v331_v39, 0.0  ;;  %v299_v49 = vmul.f32 %v618_v0, %v259_v35  ;;  %v332_v50 = vadd.f32 %v628_v1, %v294_v42  ;;  %v333_v51 = vadd.f32 %v628_v1, %v295_v43 }
  0x27   : > { %394 = vst [vmem:[%s651_s26 + $0xb0] sm:$0xff] %v362_v41  ;;  %v334_v52 = vadd.f32 %v628_v1, %v296_v44  ;;  %v300_v53 = vmul.f32 %v618_v0, %v260_v40  ;;  %v335_v54 = vadd.f32 %v628_v1, %v297_v47  ;;  %v336_v55 = vadd.f32 %v628_v1, %v298_v48 }
  0x28   : > { %395 = vst [vmem:[%s651_s26 + $0xb8] sm:$0xff] %v363_v46  ;;  %v337_v56 = vadd.f32 %v628_v1, %v299_v49  ;;  %v301_v57 = vmul.f32 %v618_v0, %v261_v45  ;;  %v364_v58 = vmax.f32 %v332_v50, 0.0  ;;  %v365_v59 = vmax.f32 %v333_v51, 0.0 }
  0x29   : > { %v366_v60 = vmax.f32 %v334_v52, 0.0  ;;  %v338_v61 = vadd.f32 %v628_v1, %v300_v53  ;;  %v367_v62 = vmax.f32 %v335_v54, 0.0  ;;  %v368_v63 = vmax.f32 %v336_v55, 0.0 }
  0x2a   : > { %v369_v2 = vmax.f32 %v337_v56, 0.0  ;;  %v339_v3 = vadd.f32 %v628_v1, %v301_v57  ;;  %396 = vst [vmem:[%s651_s26 + $0xc0] sm:$0xff] %v364_v58  ;;  %397 = vst [vmem:[%s651_s26 + $0xc8] sm:$0xff] %v365_v59 }
  0x2b   : > { %398 = vst [vmem:[%s651_s26 + $0xd0] sm:$0xff] %v366_v60  ;;  %v370_v4 = vmax.f32 %v338_v61, 0.0  ;;  %399 = vst [vmem:[%s651_s26 + $0xd8] sm:$0xff] %v367_v62 }
  0x2c   : > { %400 = vst [vmem:[%s651_s26 + $0xe0] sm:$0xff] %v368_v63  ;;  %401 = vst [vmem:[%s651_s26 + $0xe8] sm:$0xff] %v369_v2  ;;  %v371_v0 = vmax.f32 %v339_v3, 0.0 }
  0x2d   : > { %402 = vst [vmem:[%s651_s26 + $0xf0] sm:$0xff] %v370_v4 }
  0x2e   : > { %403 = vst [vmem:[%s651_s26 + $0xf8] sm:$0xff] %v371_v0 }
  0x2f PF: > { %s13_s14 = sadd.s32 1, %s575_s14   ;;  %s776_s12 = smov %s571_s13 }
  0x30   : > { %p10_p5 = scmp.ge.s32.totalorder %s13_s14, 4   ;;  %s777_s13 = smov %s779_s15 }
  0x32   :  { %12 = sbr.rel (!%p10_p5) target bundleno = 2 (0x2), region = 68 }

// kernel: conv_batch_norm.2
= control target key start
LH: loop header
LB: loop body
LE: loop exit
PB: predicated region body
PF: predicated region fallthrough
CT: control target
= control target key end

     0   :  { %s1156_s15 = smov 0   ;;  %s1158_s16 = smov 0   ;;  %s1436_s0 = inlined_call_operand.vmem [shape: f32[2,16,16,36], index: 0, kind: input, shape index: {}]   ;;  %s1437_s1 = inlined_call_operand.vmem [shape: f32[36,128], index: 1, kind: input, shape index: {}]   ;;  %s1438_s2 = inlined_call_operand.vmem [shape: f32[1,1,128], index: 2, kind: input, shape index: {}]   ;;  %s1439_s3 = inlined_call_operand.vmem [shape: f32[2,16,16,128], index: 3, kind: output, shape index: {0}]   ;;  %s1440_s4 = inlined_call_operand.vmem [shape: f32[2,1,2,128], index: 4, kind: output, shape index: {1}]  }
   0x1   :  { %s1160_s17 = smov 0  }
   0x2 LB: > { %s27_s18 = sadd.s32 1, %s1125_s16  ;;  %p930_p0 = scmp.ge.s32.totalorder %s1129_s17, 1  ;;  %s1129_s17 = sphi %s1160_s17, %s15_s17   ;;  %s1125_s16 = sphi %s1158_s16, %s1442_s16   ;;  %s1121_s15 = sphi %s1156_s15, %s1441_s15  }
   0x3   : > { %p29_p1 = scmp.ge.s32.totalorder %s27_s18, 2  ;;  %p198_p2 = scmp.lt.s32.totalorder %s1129_s17, 3 }
   0x5   : > { %s1444_s18 = smov (%p29_p1, %s27_s18), 0  ;;  %p199_p3 = pnand %p930_p0, %p198_p2 }
   0x6   : > { %v300_v0 = vld [vmem:[%s1437_s1] sm:$0xff] (!%p199_p3)  ;;  %v301_v1 = vld [vmem:[%s1437_s1 + $0x8] sm:$0xff] (!%p199_p3)  ;;  %v302_v2 = vld [vmem:[%s1437_s1 + $0x10] sm:$0xff] (!%p199_p3)  ;;  %p241_p4 = scmp.lt.s32.totalorder (!%p199_p3), %s1121_s15, 1  ;;  %vm312_vm0 = vcmask (!%p199_p3), 293888   ;;  %vm409_vm1 = vcmask (!%p199_p3), 1043456  }
   0x7   : > { %202 = sbr.rel (%p199_p3) target bundleno = 313 (0x139), region = 32  ;;  %v1069_v3 = vpack.c.bf16 (!%p199_p3), %v301_v1, %v300_v0  ;;  %v303_v4 = vld [vmem:[%s1437_s1 + $0x18] sm:$0xff] (!%p199_p3)  ;;  %v304_v6 = vld [vmem:[%s1437_s1 + $0x20] sm:$0xf] (!%p199_p3) }
   0x8   : > { %v1073_v5 = vpack.c.bf16 (!%p199_p3), %v303_v4, %v302_v2  ;;  %v1266_v39 = vld [vmem:[%s1438_s2] ss:$0 sm:$0xff] (!%p199_p3) }
   0x9   : > { %1070 = vmatprep.subr.bf16.mxu0 (!%p199_p3), %v1069_v3  ;;  %1077 = vmatprep.subr.bf16.mxu1 (!%p199_p3), %v1069_v3 }
   0xa   : > { %1072 = vmatpush3.bf16.msra.mxu0 (!%p199_p3), %v1069_v3  ;;  %1080 = vmatpush3.bf16.msra.mxu1 (!%p199_p3), %v1069_v3 }
   0xb   : > { %1074 = vmatprep.subr.bf16.mxu0 (!%p199_p3), %v1073_v5  ;;  %1078 = vmatprep.subr.bf16.mxu1 (!%p199_p3), %v1073_v5 }
   0xe   : > { %s1446_s15 = smov (!%p241_p4, %s1121_s15), 1  ;;  %1076 = vmatpush3.bf16.msra.mxu0 %v1073_v5  ;;  %1081 = vmatpush3.bf16.msra.mxu1 %v1073_v5 }
   0xf   : > { %s972_s27 = sshll.u32 %s1446_s15, 8  ;;  %1019 = vmatprep.subr.msk.mxu0 %vm409_vm1, %v304_v6  ;;  %1079 = vmatprep.subr.msk.mxu1 %vm409_vm1, %v304_v6  ;;  %s935_s12 = sshll.u32 %s1446_s15, 1 }
  0x10   : > { %s1194_s30 = scalar_lea.vmem %s1436_s0, %s972_s27  ;;  %s1273_s11 = scalar_lea.vmem %s1439_s3, %s972_s27 }
  0x11   : > { %v268_v7 = vld [vmem:[%s1194_s30] sm:$0xff]  ;;  %v269_v8 = vld [vmem:[%s1194_s30 + $0x8] sm:$0xff]  ;;  %v270_v9 = vld [vmem:[%s1194_s30 + $0x10] sm:$0xff]  ;;  %s267_s19 = scalar_lea.vmem %s1440_s4, %s935_s12 }
  0x12   : > { %1021 = vmatprep.mubr.msk.f32.mxu0 %vm312_vm0, %v268_v7  ;;  %v284_v10 = vld [vmem:[%s1194_s30 + $0x80] sm:$0xff]  ;;  %v285_v11 = vld [vmem:[%s1194_s30 + $0x88] sm:$0xff]  ;;  %1020 = vmatpush3.msk.msra.mxu0 %vm409_vm1, %v304_v6  ;;  %v286_v12 = vld [vmem:[%s1194_s30 + $0x90] sm:$0xff] }
  0x13   : > { %1082 = vmatpush3.msk.msra.mxu1 %vm409_vm1, %v304_v6  ;;  %1022 = vmatmul.mubr.msk.f32.vlgmr.msra.gmra.mrb[0].mxu0 %vm312_vm0, %v269_v8  ;;  %v271_v13 = vld [vmem:[%s1194_s30 + $0x18] sm:$0xff]  ;;  %v272_v14 = vld [vmem:[%s1194_s30 + $0x20] sm:$0xff]  ;;  %v273_v17 = vld [vmem:[%s1194_s30 + $0x28] sm:$0xff] }
  0x14   : > { %1045 = vmatprep.mubr.msk.f32.mxu1 %vm312_vm0, %v284_v10  ;;  %1024 = vmatprep.mubr.msk.f32.mxu0 %vm312_vm0, %v270_v9  ;;  %v287_v15 = vld [vmem:[%s1194_s30 + $0x98] sm:$0xff]  ;;  %v288_v16 = vld [vmem:[%s1194_s30 + $0xa0] sm:$0xff]  ;;  %v274_v18 = vld [vmem:[%s1194_s30 + $0x30] sm:$0xff] }
  0x15   : > { %1046 = vmatmul.mubr.msk.f32.vlgmr.msra.gmra.mrb[0].mxu1 %vm312_vm0, %v285_v11  ;;  %v289_v19 = vld [vmem:[%s1194_s30 + $0xa8] sm:$0xff]  ;;  %v290_v20 = vld [vmem:[%s1194_s30 + $0xb0] sm:$0xff]  ;;  %v275_v21 = vld [vmem:[%s1194_s30 + $0x38] sm:$0xff] }
  0x16   : > { %1048 = vmatprep.mubr.msk.f32.mxu1 %vm312_vm0, %v286_v12  ;;  %v276_v22 = vld [vmem:[%s1194_s30 + $0x40] sm:$0xff]  ;;  %v291_v23 = vld [vmem:[%s1194_s30 + $0xb8] sm:$0xff]  ;;  %v277_v25 = vld [vmem:[%s1194_s30 + $0x48] sm:$0xff] }
  0x17   : > { %1025 = vmatmul.mubr.msk.f32.gmra.mrb[2].mxu0 %vm312_vm0, %v271_v13  ;;  %v292_v24 = vld [vmem:[%s1194_s30 + $0xc0] sm:$0xff]  ;;  %v278_v26 = vld [vmem:[%s1194_s30 + $0x50] sm:$0xff]  ;;  %v293_v27 = vld [vmem:[%s1194_s30 + $0xc8] sm:$0xff] }
  0x18   : > { %1027 = vmatprep.mubr.msk.f32.mxu0 %vm312_vm0, %v272_v14  ;;  %v294_v28 = vld [vmem:[%s1194_s30 + $0xd0] sm:$0xff]  ;;  %v279_v29 = vld [vmem:[%s1194_s30 + $0x58] sm:$0xff]  ;;  %v280_v30 = vld [vmem:[%s1194_s30 + $0x60] sm:$0xff] }
  0x19   : > { %1049 = vmatmul.mubr.msk.f32.gmra.mrb[2].mxu1 %vm312_vm0, %v287_v15  ;;  %v295_v31 = vld [vmem:[%s1194_s30 + $0xd8] sm:$0xff]  ;;  %v296_v32 = vld [vmem:[%s1194_s30 + $0xe0] sm:$0xff]  ;;  %v281_v33 = vld [vmem:[%s1194_s30 + $0x68] sm:$0xff] }
  0x1a   : > { %1051 = vmatprep.mubr.msk.f32.mxu1 %vm312_vm0, %v288_v16  ;;  %v282_v34 = vld [vmem:[%s1194_s30 + $0x70] sm:$0xff]  ;;  %v297_v35 = vld [vmem:[%s1194_s30 + $0xe8] sm:$0xff]  ;;  %v283_v37 = vld [vmem:[%s1194_s30 + $0x78] sm:$0xff] }
  0x1b   : > { %1028 = vmatmul.mubr.msk.f32.gmra.mrb[4].mxu0 %vm312_vm0, %v273_v17  ;;  %v298_v36 = vld [vmem:[%s1194_s30 + $0xf0] sm:$0xff]  ;;  %v299_v38 = vld [vmem:[%s1194_s30 + $0xf8] sm:$0xff] }
  0x1c   : > { %1030 = vmatprep.mubr.msk.f32.mxu0 %vm312_vm0, %v274_v18 }
  0x1d   : > { %1052 = vmatmul.mubr.msk.f32.gmra.mrb[4].mxu1 %vm312_vm0, %v289_v19 }
  0x1e   : > { %1054 = vmatprep.mubr.msk.f32.mxu1 %vm312_vm0, %v290_v20 }
  0x1f   : > { %1031 = vmatmul.mubr.msk.f32.gmra.mrb[6].mxu0 %vm312_vm0, %v275_v21 }
  0x20   : > { %1033 = vmatprep.mubr.msk.f32.mxu0 %vm312_vm0, %v276_v22 }
  0x21   : > { %1055 = vmatmul.mubr.msk.f32.gmra.mrb[6].mxu1 %vm312_vm0, %v291_v23 }
  0x22   : > { %1057 = vmatprep.mubr.msk.f32.mxu1 %vm312_vm0, %v292_v24 }
  0x23   : > { %1034 = vmatmul.mubr.msk.f32.gmra.mrb[8].mxu0 %vm312_vm0, %v277_v25 }
  0x24   : > { %1036 = vmatprep.mubr.msk.f32.mxu0 %vm312_vm0, %v278_v26 }
  0x25   : > { %1058 = vmatmul.mubr.msk.f32.gmra.mrb[8].mxu1 %vm312_vm0, %v293_v27 }
  0x26   : > { %1060 = vmatprep.mubr.msk.f32.mxu1 %vm312_vm0, %v294_v28 }
  0x27   : > { %1037 = vmatmul.mubr.msk.f32.gmra.mrb[10].mxu0 %vm312_vm0, %v279_v29 }
  0x28   : > { %1039 = vmatprep.mubr.msk.f32.mxu0 %vm312_vm0, %v280_v30 }
  0x29   : > { %1061 = vmatmul.mubr.msk.f32.gmra.mrb[10].mxu1 %vm312_vm0, %v295_v31 }
  0x2a   : > { %1063 = vmatprep.mubr.msk.f32.mxu1 %vm312_vm0, %v296_v32 }
  0x2b   : > { %1040 = vmatmul.mubr.msk.f32.gmra.mrb[12].mxu0 %vm312_vm0, %v281_v33 }
  0x2c   : > { %1042 = vmatprep.mubr.msk.f32.mxu0 %vm312_vm0, %v282_v34 }
  0x2d   : > { %1064 = vmatmul.mubr.msk.f32.gmra.mrb[12].mxu1 %vm312_vm0, %v297_v35 }
  0x2e   : > { %1066 = vmatprep.mubr.msk.f32.mxu1 %vm312_vm0, %v298_v36 }
  0x2f   : > { %1043 = vmatmul.mubr.msk.f32.gmra.mrb[14].mxu0 %vm312_vm0, %v283_v37 }
  0x31   : > { %1067 = vmatmul.mubr.msk.f32.gmra.mrb[14].mxu1 %vm312_vm0, %v299_v38 }
  0xe6   : > { %v1023_v40 = vpop.f32.mrb[0].mxu0 }
  0xe7   : > { %v485_v41 = vadd.f32 %v1023_v40, %v1266_v39  ;;  %v479_v42 = vpop.f32.mrb[1].mxu0 }
  0xe8   : > { %v1047_v43 = vpop.f32.mrb[0].mxu1  ;;  %v480_v44 = vadd.f32 %v1266_v39, %v479_v42 }
  0xe9   : > { %v1278_v45 = vadd.f32 %v1047_v43, %v1266_v39  ;;  %v559_v46 = vpop.f32.mrb[1].mxu1  ;;  %639 = vst [vmem:[%s1273_s11 + $0x8] sm:$0xff] %v485_v41  ;;  %v709_v47 = vmul.f32 %v485_v41, %v485_v41 }
  0xea   : > { %v1282_v48 = vadd.f32 %v1266_v39, %v559_v46  ;;  %638 = vst [vmem:[%s1273_s11] sm:$0xff] %v480_v44  ;;  %v670_v49 = vadd.f32 %v485_v41, %v480_v44  ;;  %v708_v50 = vmul.f32 %v480_v44, %v480_v44  ;;  %v1026_v51 = vpop.f32.mrb[2].mxu0 }
  0xeb   : > { %655 = vst [vmem:[%s1273_s11 + $0x88] sm:$0xff] %v1278_v45  ;;  %v495_v52 = vadd.f32 %v1026_v51, %v1266_v39  ;;  %v489_v53 = vpop.f32.mrb[3].mxu0 }
  0xec   : > { %654 = vst [vmem:[%s1273_s11 + $0x80] sm:$0xff] %v1282_v48  ;;  %v1050_v54 = vpop.f32.mrb[2].mxu1  ;;  %v740_v55 = vadd.f32 %v709_v47, %v708_v50  ;;  %v490_v56 = vadd.f32 %v1266_v39, %v489_v53 }
  0xed   : > { %v1292_v57 = vadd.f32 %v1050_v54, %v1266_v39  ;;  %v569_v58 = vpop.f32.mrb[3].mxu1  ;;  %641 = vst [vmem:[%s1273_s11 + $0x18] sm:$0xff] %v495_v52  ;;  %v711_v63 = vmul.f32 %v495_v52, %v495_v52 }
  0xee   : > { %v1296_v59 = vadd.f32 %v1266_v39, %v569_v58  ;;  %640 = vst [vmem:[%s1273_s11 + $0x10] sm:$0xff] %v490_v56  ;;  %v671_v60 = vadd.f32 %v670_v49, %v490_v56  ;;  %v710_v61 = vmul.f32 %v490_v56, %v490_v56  ;;  %v1029_v62 = vpop.f32.mrb[4].mxu0 }
  0xef   : > { %657 = vst [vmem:[%s1273_s11 + $0x98] sm:$0xff] %v1292_v57  ;;  %v505_v0 = vadd.f32 %v1029_v62, %v1266_v39  ;;  %v499_v1 = vpop.f32.mrb[5].mxu0 }
  0xf0   : > { %656 = vst [vmem:[%s1273_s11 + $0x90] sm:$0xff] %v1296_v59  ;;  %v1053_v2 = vpop.f32.mrb[4].mxu1  ;;  %v741_v3 = vadd.f32 %v740_v55, %v710_v61  ;;  %v500_v4 = vadd.f32 %v1266_v39, %v499_v1  ;;  %v672_v5 = vadd.f32 %v671_v60, %v495_v52 }
  0xf1   : > { %v1306_v6 = vadd.f32 %v1053_v2, %v1266_v39  ;;  %v579_v7 = vpop.f32.mrb[5].mxu1  ;;  %643 = vst [vmem:[%s1273_s11 + $0x28] sm:$0xff] %v505_v0  ;;  %v713_v13 = vmul.f32 %v505_v0, %v505_v0 }
  0xf2   : > { %v1310_v8 = vadd.f32 %v1266_v39, %v579_v7  ;;  %642 = vst [vmem:[%s1273_s11 + $0x20] sm:$0xff] %v500_v4  ;;  %v673_v9 = vadd.f32 %v672_v5, %v500_v4  ;;  %v712_v10 = vmul.f32 %v500_v4, %v500_v4  ;;  %v742_v11 = vadd.f32 %v741_v3, %v711_v63  ;;  %v1032_v12 = vpop.f32.mrb[6].mxu0 }
  0xf3   : > { %659 = vst [vmem:[%s1273_s11 + $0xa8] sm:$0xff] %v1306_v6  ;;  %v515_v14 = vadd.f32 %v1032_v12, %v1266_v39  ;;  %v509_v15 = vpop.f32.mrb[7].mxu0 }
  0xf4   : > { %658 = vst [vmem:[%s1273_s11 + $0xa0] sm:$0xff] %v1310_v8  ;;  %v1056_v16 = vpop.f32.mrb[6].mxu1  ;;  %v743_v17 = vadd.f32 %v742_v11, %v712_v10  ;;  %v510_v18 = vadd.f32 %v1266_v39, %v509_v15  ;;  %v674_v19 = vadd.f32 %v673_v9, %v505_v0 }
  0xf5   : > { %v1320_v20 = vadd.f32 %v1056_v16, %v1266_v39  ;;  %v589_v21 = vpop.f32.mrb[7].mxu1  ;;  %645 = vst [vmem:[%s1273_s11 + $0x38] sm:$0xff] %v515_v14  ;;  %v715_v27 = vmul.f32 %v515_v14, %v515_v14 }
  0xf6   : > { %v1324_v22 = vadd.f32 %v1266_v39, %v589_v21  ;;  %644 = vst [vmem:[%s1273_s11 + $0x30] sm:$0xff] %v510_v18  ;;  %v675_v23 = vadd.f32 %v674_v19, %v510_v18  ;;  %v714_v24 = vmul.f32 %v510_v18, %v510_v18  ;;  %v744_v25 = vadd.f32 %v743_v17, %v713_v13  ;;  %v1035_v26 = vpop.f32.mrb[8].mxu0 }
  0xf7   : > { %661 = vst [vmem:[%s1273_s11 + $0xb8] sm:$0xff] %v1320_v20  ;;  %v525_v28 = vadd.f32 %v1035_v26, %v1266_v39  ;;  %v519_v29 = vpop.f32.mrb[9].mxu0 }
  0xf8   : > { %660 = vst [vmem:[%s1273_s11 + $0xb0] sm:$0xff] %v1324_v22  ;;  %v1059_v30 = vpop.f32.mrb[8].mxu1  ;;  %v745_v31 = vadd.f32 %v744_v25, %v714_v24  ;;  %v520_v32 = vadd.f32 %v1266_v39, %v519_v29  ;;  %v676_v33 = vadd.f32 %v675_v23, %v515_v14 }
  0xf9   : > { %v1334_v34 = vadd.f32 %v1059_v30, %v1266_v39  ;;  %v599_v35 = vpop.f32.mrb[9].mxu1  ;;  %647 = vst [vmem:[%s1273_s11 + $0x48] sm:$0xff] %v525_v28  ;;  %v717_v42 = vmul.f32 %v525_v28, %v525_v28  ;;  %v724_v30 = vmul.f32 %v1282_v48, %v1282_v48 }
  0xfa   : > { %v1338_v36 = vadd.f32 %v1266_v39, %v599_v35  ;;  %646 = vst [vmem:[%s1273_s11 + $0x40] sm:$0xff] %v520_v32  ;;  %v677_v37 = vadd.f32 %v676_v33, %v520_v32  ;;  %v716_v38 = vmul.f32 %v520_v32, %v520_v32  ;;  %v746_v40 = vadd.f32 %v745_v31, %v715_v27  ;;  %v1038_v41 = vpop.f32.mrb[10].mxu0 }
  0xfb   : > { %663 = vst [vmem:[%s1273_s11 + $0xc8] sm:$0xff] %v1334_v34  ;;  %v535_v43 = vadd.f32 %v1038_v41, %v1266_v39  ;;  %v529_v44 = vpop.f32.mrb[11].mxu0  ;;  %v725_v33 = vmul.f32 %v1278_v45, %v1278_v45  ;;  %v727_v41 = vmul.f32 %v1292_v57, %v1292_v57 }
  0xfc   : > { %662 = vst [vmem:[%s1273_s11 + $0xc0] sm:$0xff] %v1338_v36  ;;  %v1062_v46 = vpop.f32.mrb[10].mxu1  ;;  %v747_v47 = vadd.f32 %v746_v40, %v716_v38  ;;  %v530_v49 = vadd.f32 %v1266_v39, %v529_v44  ;;  %v678_v50 = vadd.f32 %v677_v37, %v525_v28  ;;  %v726_v37 = vmul.f32 %v1296_v59, %v1296_v59 }
  0xfd   : > { %v1348_v51 = vadd.f32 %v1062_v46, %v1266_v39  ;;  %v609_v52 = vpop.f32.mrb[11].mxu1  ;;  %649 = vst [vmem:[%s1273_s11 + $0x58] sm:$0xff] %v535_v43  ;;  %v719_v60 = vmul.f32 %v535_v43, %v535_v43 }
  0xfe   : > { %v1352_v53 = vadd.f32 %v1266_v39, %v609_v52  ;;  %648 = vst [vmem:[%s1273_s11 + $0x50] sm:$0xff] %v530_v49  ;;  %v679_v54 = vadd.f32 %v678_v50, %v530_v49  ;;  %v718_v55 = vmul.f32 %v530_v49, %v530_v49  ;;  %v748_v56 = vadd.f32 %v747_v47, %v717_v42  ;;  %v1041_v58 = vpop.f32.mrb[12].mxu0 }
  0xff   : > { %665 = vst [vmem:[%s1273_s11 + $0xd8] sm:$0xff] %v1348_v51  ;;  %v545_v61 = vadd.f32 %v1041_v58, %v1266_v39  ;;  %v539_v62 = vpop.f32.mrb[13].mxu0 }
 0x100   : > { %664 = vst [vmem:[%s1273_s11 + $0xd0] sm:$0xff] %v1352_v53  ;;  %v1065_v63 = vpop.f32.mrb[12].mxu1  ;;  %v749_v0 = vadd.f32 %v748_v56, %v718_v55  ;;  %v540_v1 = vadd.f32 %v1266_v39, %v539_v62  ;;  %v680_v2 = vadd.f32 %v679_v54, %v535_v43 }
 0x101   : > { %v1362_v3 = vadd.f32 %v1065_v63, %v1266_v39  ;;  %v619_v4 = vpop.f32.mrb[13].mxu1  ;;  %651 = vst [vmem:[%s1273_s11 + $0x68] sm:$0xff] %v545_v61  ;;  %v721_v12 = vmul.f32 %v545_v61, %v545_v61 }
 0x102   : > { %v1366_v5 = vadd.f32 %v1266_v39, %v619_v4  ;;  %650 = vst [vmem:[%s1273_s11 + $0x60] sm:$0xff] %v540_v1  ;;  %v681_v7 = vadd.f32 %v680_v2, %v540_v1  ;;  %v720_v9 = vmul.f32 %v540_v1, %v540_v1  ;;  %v750_v10 = vadd.f32 %v749_v0, %v719_v60  ;;  %v1044_v11 = vpop.f32.mrb[14].mxu0 }
 0x103   : > { %667 = vst [vmem:[%s1273_s11 + $0xe8] sm:$0xff] %v1362_v3  ;;  %v555_v13 = vadd.f32 %v1044_v11, %v1266_v39  ;;  %v549_v14 = vpop.f32.mrb[15].mxu0 }
 0x104   : > { %666 = vst [vmem:[%s1273_s11 + $0xe0] sm:$0xff] %v1366_v5  ;;  %v1068_v15 = vpop.f32.mrb[14].mxu1  ;;  %v751_v16 = vadd.f32 %v750_v10, %v720_v9  ;;  %v550_v17 = vadd.f32 %v1266_v39, %v549_v14  ;;  %v682_v18 = vadd.f32 %v681_v7, %v545_v61 }
 0x105   : > { %v635_v19 = vadd.f32 %v1068_v15, %v1266_v39  ;;  %v629_v21 = vpop.f32.mrb[15].mxu1  ;;  %653 = vst [vmem:[%s1273_s11 + $0x78] sm:$0xff] %v555_v13  ;;  %v723_v27 = vmul.f32 %v555_v13, %v555_v13 }
 0x106   : > { %v630_v23 = vadd.f32 %v1266_v39, %v629_v21  ;;  %652 = vst [vmem:[%s1273_s11 + $0x70] sm:$0xff] %v550_v17  ;;  %v683_v24 = vadd.f32 %v682_v18, %v550_v17  ;;  %v722_v25 = vmul.f32 %v550_v17, %v550_v17  ;;  %v752_v26 = vadd.f32 %v751_v16, %v721_v12 }
 0x107   : > { %669 = vst [vmem:[%s1273_s11 + $0xf8] sm:$0xff] %v635_v19  ;;  %v739_v12 = vmul.f32 %v635_v19, %v635_v19 }
 0x108   : > { %668 = vst [vmem:[%s1273_s11 + $0xf0] sm:$0xff] %v630_v23  ;;  %v753_v28 = vadd.f32 %v752_v26, %v722_v25  ;;  %v684_v29 = vadd.f32 %v683_v24, %v555_v13  ;;  %v738_v9 = vmul.f32 %v630_v23, %v630_v23 }
 0x10a   : > { %v685_v31 = vadd.f32 %v684_v29, %v1282_v48  ;;  %v754_v32 = vadd.f32 %v753_v28, %v723_v27  ;;  %v728_v48 = vmul.f32 %v1310_v8, %v1310_v8 }
 0x10c   : > { %v755_v35 = vadd.f32 %v754_v32, %v724_v30  ;;  %v686_v39 = vadd.f32 %v685_v31, %v1278_v45  ;;  %v729_v45 = vmul.f32 %v1306_v6, %v1306_v6 }
 0x10e   : > { %v687_v38 = vadd.f32 %v686_v39, %v1296_v59  ;;  %v756_v40 = vadd.f32 %v755_v35, %v725_v33  ;;  %v730_v59 = vmul.f32 %v1324_v22, %v1324_v22 }
 0x110   : > { %v757_v42 = vadd.f32 %v756_v40, %v726_v37  ;;  %v688_v43 = vadd.f32 %v687_v38, %v1292_v57  ;;  %v731_v57 = vmul.f32 %v1320_v20, %v1320_v20 }
 0x112   : > { %v689_v44 = vadd.f32 %v688_v43, %v1310_v8  ;;  %v758_v46 = vadd.f32 %v757_v42, %v727_v41  ;;  %v732_v8 = vmul.f32 %v1338_v36, %v1338_v36 }
 0x114   : > { %v759_v47 = vadd.f32 %v758_v46, %v728_v48  ;;  %v690_v49 = vadd.f32 %v689_v44, %v1306_v6  ;;  %v733_v6 = vmul.f32 %v1334_v34, %v1334_v34 }
 0x116   : > { %v691_v50 = vadd.f32 %v690_v49, %v1324_v22  ;;  %v760_v52 = vadd.f32 %v759_v47, %v729_v45  ;;  %v734_v22 = vmul.f32 %v1352_v53, %v1352_v53 }
 0x118   : > { %v761_v54 = vadd.f32 %v760_v52, %v730_v59  ;;  %v692_v55 = vadd.f32 %v691_v50, %v1320_v20  ;;  %v735_v20 = vmul.f32 %v1348_v51, %v1348_v51 }
 0x11a   : > { %v693_v56 = vadd.f32 %v692_v55, %v1338_v36  ;;  %v762_v58 = vadd.f32 %v761_v54, %v731_v57  ;;  %v736_v36 = vmul.f32 %v1366_v5, %v1366_v5 }
 0x11c   : > { %v763_v60 = vadd.f32 %v762_v58, %v732_v8  ;;  %v694_v61 = vadd.f32 %v693_v56, %v1334_v34  ;;  %v737_v34 = vmul.f32 %v1362_v3, %v1362_v3 }
 0x11e   : > { %v695_v62 = vadd.f32 %v694_v61, %v1352_v53  ;;  %v764_v63 = vadd.f32 %v763_v60, %v733_v6 }
 0x120   : > { %v765_v0 = vadd.f32 %v764_v63, %v734_v22  ;;  %v696_v1 = vadd.f32 %v695_v62, %v1348_v51 }
 0x122   : > { %v697_v2 = vadd.f32 %v696_v1, %v1366_v5  ;;  %v766_v4 = vadd.f32 %v765_v0, %v735_v20 }
 0x124   : > { %v767_v7 = vadd.f32 %v766_v4, %v736_v36  ;;  %v698_v53 = vadd.f32 %v697_v2, %v1362_v3 }
 0x126   : > { %v699_v10 = vadd.f32 %v698_v53, %v630_v23  ;;  %v768_v11 = vadd.f32 %v767_v7, %v737_v34 }
 0x128   : > { %v700_v13 = vadd.f32 %v699_v10, %v635_v19  ;;  %v769_v14 = vadd.f32 %v768_v11, %v738_v9 }
 0x12a   : > { %v701_v51 = vrot.slane %v700_v13, 4  ;;  %v770_v15 = vadd.f32 %v769_v14, %v739_v12 }
 0x12c   : > { %v702_v16 = vadd.f32 %v701_v51, %v700_v13  ;;  %v771_v17 = vrot.slane %v770_v15, 4 }
 0x12e   : > { %v703_v18 = vrot.slane %v702_v16, 2  ;;  %v772_v5 = vadd.f32 %v771_v17, %v770_v15 }
 0x130   : > { %v704_v21 = vadd.f32 %v703_v18, %v702_v16  ;;  %v773_v24 = vrot.slane %v772_v5, 2 }
 0x132   : > { %v705_v25 = vrot.slane %v704_v21, 1  ;;  %v774_v26 = vadd.f32 %v773_v24, %v772_v5 }
 0x134   : > { %v706_v3 = vadd.f32 %v705_v25, %v704_v21  ;;  %v775_v23 = vrot.slane %v774_v26, 1 }
 0x136   : > { %707 = vst [vmem:[%s267_s19] sm:$0x1] %v706_v3  ;;  %v776_v19 = vadd.f32 %v775_v23, %v774_v26 }
 0x138   : > { %777 = vst [vmem:[%s267_s19 + $0x1] sm:$0x1] %v776_v19 }
 0x139 PF: > { %s15_s17 = sadd.s32 1, %s1129_s17   ;;  %s1441_s15 = smov %s1125_s16 }
 0x13a   : > { %p12_p5 = scmp.ge.s32.totalorder %s15_s17, 4   ;;  %s1442_s16 = smov %s1444_s18 }
 0x13c   :  { %14 = sbr.rel (!%p12_p5) target bundleno = 2 (0x2), region = 80 }

</bundles_post_ra>
